<compile_context>
chip_gen: v5e
topology: v5e:2x2
jax: 0.10.0
libtpu: 0.0.40
codegen_flags: <defaults>
</compile_context>

<pallas_src>
import functools

import numpy as np
import jax
import jax.numpy as jnp
from jax.experimental import pallas as pl
from jax.experimental.pallas import tpu as pltpu

BN_EPS = 1e-5
_SQRT_HALF = 0.7071067811865476


def _gelu_exact(x):
    # Exact (erf-based) GELU matching torch.nn.GELU() default.
    # erf via Abramowitz & Stegun 7.1.26 (|abs err| < 1.5e-7): exp + polynomial;
    # the divide runs on the EUP slot via the approximate reciprocal.
    z = x * _SQRT_HALF
    az = jnp.abs(z)
    t = pl.reciprocal(1.0 + 0.3275911 * az, approx=True)
    poly = t * (0.254829592 + t * (-0.284496736 + t * (1.421413741
               + t * (-1.453152027 + t * 1.061405429))))
    erf_abs = 1.0 - poly * jnp.exp(-az * az)
    erf = jnp.where(z >= 0.0, erf_abs, -erf_abs)
    return 0.5 * x * (1.0 + erf)


def _stats_kernel(x_ref, sum_ref, sq_ref):
    """Per-batch partial BatchNorm2d statistics (sum, sum of squares)."""
    i = pl.program_id(1)

    @pl.when(i == 0)
    def _init():
        sum_ref[...] = jnp.zeros_like(sum_ref)
        sq_ref[...] = jnp.zeros_like(sq_ref)

    _, th, w, c = x_ref.shape
    x2 = x_ref[...].reshape(th * w, c)
    sum_ref[...] += jnp.sum(x2, axis=0, keepdims=True)
    sq_ref[...] += jnp.sum(x2 * x2, axis=0, keepdims=True)


def _main_kernel(x_ref, xt_ref, xb_ref, scale_ref, shift_ref,
                 wp_ref, bp_ref, wft_ref, bf_ref, o_ref, *, step):
    """BN(affine)+GELU -> 4x 1x1 proj (one CxC matmul) -> replicate shifts ->
    1x1 fuse (single K=C matmul) for one TH-row tile."""
    _, TH, W, C = x_ref.shape
    S = step
    Cq = C // 4

    i = pl.program_id(1)
    # Replicate the top/bottom image edge in-register (no padded-x HBM copy):
    # at the first (last) tile the fetched halo rows are replaced by the
    # broadcasted boundary row of the main block.
    top_rep = jnp.where(i == 0, 1.0, 0.0)
    bot_rep = jnp.where(i == pl.num_programs(1) - 1, 1.0, 0.0)

    xm = x_ref[0]                                               # (TH, W, C) f32
    x_top = top_rep * xm[:1] + (1.0 - top_rep) * xt_ref[0]      # (S, W, C)
    x_bot = bot_rep * xm[TH - 1:] + (1.0 - bot_rep) * xb_ref[0]

    scale = scale_ref[...]                                      # (1, C)
    shift = shift_ref[...]

    # BN + GELU with the bf16 MXU cast fused into the epilogue (no f32 window).
    a_top = _gelu_exact(x_top * scale + shift).astype(jnp.bfloat16)
    a_mid = _gelu_exact(xm * scale + shift).astype(jnp.bfloat16)
    a_bot = _gelu_exact(x_bot * scale + shift).astype(jnp.bfloat16)
    aw = jnp.concatenate([a_top, a_mid, a_bot], axis=0)         # (TH+2S, W, C)

    # All four 1x1 projections (output lanes ordered [t | b | r | l]) fused into
    # one CxC bf16 matmul over the halo window, f32 accumulation.
    p3 = (jnp.dot(aw.reshape((TH + 2 * S) * W, C), wp_ref[...],
                  preferred_element_type=jnp.float32)
          + bp_ref[...]).reshape(TH + 2 * S, W, C)

    pt = p3[2 * S:]             # rows h+step (clamped)  -> x_t lanes [0, Cq)
    pb = p3[:TH]                # rows h-step (clamped)  -> x_b lanes [Cq, 2Cq)
    pc = p3[S:TH + S]           # centre rows            -> x_r / x_l lanes

    # Replicate-clamped W shifts of the centre rows (full C lanes; only the
    # relevant quarter survives the lane-mask select below).
    # TODO(synk): pltpu.roll(axis=1) + iota mask would keep this on the XLU slot.
    xr = jnp.concatenate(
        [jnp.broadcast_to(pc[:, :1, :], (TH, S, C)), pc[:, :W - S, :]], axis=1)
    xl = jnp.concatenate(
        [pc[:, S:, :], jnp.broadcast_to(pc[:, W - 1:, :], (TH, S, C))], axis=1)

    # torch.cat([x_t, x_b, x_r, x_l], dim=1): the quarters already sit at the
    # right lane offsets, so the concat is three lane-mask selects (no shuffles).
    lane = jax.lax.broadcasted_iota(jnp.int32, (1, 1, C), 2)
    cat = jnp.where(lane < Cq, pt,
                    jnp.where(lane < 2 * Cq, pb,
                              jnp.where(lane < 3 * Cq, xr, xl)))

    # Fuse 1x1 conv as a single K=C bf16 MXU matmul (vs 4x K=C/4 partial matmuls).
    out = jnp.dot(cat.reshape(TH * W, C).astype(jnp.bfloat16), wft_ref[...],
                  preferred_element_type=jnp.float32) + bf_ref[...]
    o_ref[0] = out.reshape(TH, W, C).astype(o_ref.dtype)


def _pick_row_tile(H, s2, W, C, B):
    """Largest multiple of 2*step dividing H whose main block stays ~<=2 MiB so
    the double-buffered working set fits the 48 MiB VMEM limit (also inside the
    64 MiB/TC of v7x), while keeping >=2 grid blocks for the two v7x cores."""
    row_bytes = W * C * 4
    budget_rows = max(s2, (2 << 20) // row_bytes)
    divisors = [t for t in range(s2, H + 1, s2) if H % t == 0]
    fits = [t for t in divisors if t <= budget_rows] or [s2]
    multi = [t for t in fits if B * (H // t) >= 2]
    return max(multi) if multi else max(fits)


def _pick_stats_tile(H, W, C):
    """Stats is pure streaming (no halo, no weights): use big (~8 MiB) blocks."""
    row_bytes = W * C * 4
    budget_rows = max(1, (8 << 20) // row_bytes)
    return max(t for t in range(1, H + 1) if H % t == 0 and t <= budget_rows)


def shifted_pillars_forward(x_nchw, params, step):
    # TODO(synk): the NCHW<->NHWC transposes at the interface are an extra HBM
    # round trip each way; keep NHWC end-to-end when the surrounding model allows.
    x = jnp.transpose(x_nchw, (0, 2, 3, 1)).astype(jnp.float32)     # NCHW -> NHWC
    B, H, W, C = x.shape
    if C % 4 != 0:
        raise ValueError("channels must be divisible by 4")
    if not (0 < step < H and step < W):
        raise ValueError("require 0 < step < H and step < W (replicate pad)")
    S2 = 2 * step
    if H % S2 != 0:
        # TODO(synk): support ragged H (clamped tail tile).
        raise ValueError("H must be a multiple of 2*step for the tiled kernel")

    TH = _pick_row_tile(H, S2, W, C, B)
    nH = H // TH
    THs = _pick_stats_tile(H, W, C)
    nS = H // THs

    gamma = params["gamma"].astype(jnp.float32)
    beta = params["beta"].astype(jnp.float32)
    # Projection weight columns ordered [t | b | r | l] so the projected lanes
    # already match the fuse input order torch.cat([x_t, x_b, x_r, x_l], dim=1).
    wp = jnp.concatenate([params["w_t"].T, params["w_b"].T,
                          params["w_r"].T, params["w_l"].T],
                         axis=1).astype(jnp.bfloat16)
    bp = jnp.concatenate([params["b_t"], params["b_b"],
                          params["b_r"], params["b_l"]]).reshape(1, C).astype(jnp.float32)
    wft = params["w_fuse"].T.astype(jnp.bfloat16)                   # (C_in, C_out)
    bf = params["b_fuse"].reshape(1, C).astype(jnp.float32)

    # ---- Stage 1: per-batch partial BN statistics (parallel over batch) ----
    sums, sqs = pl.pallas_call(
        _stats_kernel,
        grid=(B, nS),
        in_specs=[pl.BlockSpec((1, THs, W, C), lambda b, i: (b, i, 0, 0))],
        out_specs=(pl.BlockSpec((1, 1, C), lambda b, i: (b, 0, 0)),
                   pl.BlockSpec((1, 1, C), lambda b, i: (b, 0, 0))),
        out_shape=(jax.ShapeDtypeStruct((B, 1, C), jnp.float32),
                   jax.ShapeDtypeStruct((B, 1, C), jnp.float32)),
        compiler_params=pltpu.CompilerParams(
            dimension_semantics=("parallel", "arbitrary"),
            vmem_limit_bytes=40 * 1024 * 1024),
    )(x)

    # Tiny (B,1,C)->(C,) finalize in the wrapper: fused BN scale/shift.
    count = float(B * H * W)
    mean = jnp.sum(sums, axis=(0, 1)) / count
    # TODO(synk): one-pass E[x^2]-E[x]^2 is cancellation-prone if |mean| >> std.
    var = jnp.sum(sqs, axis=(0, 1)) / count - mean * mean
    inv_std = jax.lax.rsqrt(var + BN_EPS)
    scale = (gamma * inv_std).reshape(1, C)
    shift = (beta - mean * gamma * inv_std).reshape(1, C)

    # ---- Stage 2: BN+GELU + projections + shifts + fuse, tiled over (B, H) ----
    blk = TH // step
    nblk_h = H // step
    vec_spec = pl.BlockSpec((1, C), lambda b, i: (0, 0))
    mat_spec = pl.BlockSpec((C, C), lambda b, i: (0, 0))

    out = pl.pallas_call(
        functools.partial(_main_kernel, step=step),
        grid=(B, nH),
        in_specs=[
            # main TH-row block: rows [i*TH, i*TH+TH)
            pl.BlockSpec((1, TH, W, C), lambda b, i: (b, i, 0, 0)),
            # step-row top halo: rows [i*TH-step, i*TH), clamped at the top edge
            pl.BlockSpec((1, step, W, C),
                         lambda b, i: (b, jnp.maximum(i * blk - 1, 0), 0, 0)),
            # step-row bottom halo: rows [i*TH+TH, i*TH+TH+step), clamped at bottom
            pl.BlockSpec((1, step, W, C),
                         lambda b, i: (b, jnp.minimum((i + 1) * blk, nblk_h - 1), 0, 0)),
            vec_spec, vec_spec,        # scale, shift
            mat_spec, vec_spec,        # wp, bp
            mat_spec, vec_spec,        # wft, bf
        ],
        out_specs=pl.BlockSpec((1, TH, W, C), lambda b, i: (b, i, 0, 0)),
        out_shape=jax.ShapeDtypeStruct((B, H, W, C), jnp.float32),
        compiler_params=pltpu.CompilerParams(
            dimension_semantics=("parallel", "parallel"),
            vmem_limit_bytes=48 * 1024 * 1024),
    )(x, x, x, scale, shift, wp, bp, wft, bf)

    return jnp.transpose(out, (0, 3, 1, 2))                         # back to NCHW


def reference_forward(x_nchw, params, step):
    # Pure-JAX reference mirroring the PyTorch forward (correctness check, all f32).
    x = jnp.transpose(x_nchw, (0, 2, 3, 1)).astype(jnp.float32)
    B, H, W, C = x.shape
    mean = jnp.mean(x, axis=(0, 1, 2))
    var = jnp.mean(x * x, axis=(0, 1, 2)) - mean * mean
    a = (x - mean) * (params["gamma"] / jnp.sqrt(var + BN_EPS)) + params["beta"]
    a = 0.5 * a * (1.0 + jax.scipy.special.erf(a * _SQRT_HALF))

    def proj(w, b):
        return jnp.einsum("bhwc,oc->bhwo", a, w) + b

    pt = proj(params["w_t"], params["b_t"])
    pb = proj(params["w_b"], params["b_b"])
    plf = proj(params["w_l"], params["b_l"])
    pr = proj(params["w_r"], params["b_r"])

    hp = jnp.clip(jnp.arange(H) + step, 0, H - 1)
    hm = jnp.clip(jnp.arange(H) - step, 0, H - 1)
    wpi = jnp.clip(jnp.arange(W) + step, 0, W - 1)
    wmi = jnp.clip(jnp.arange(W) - step, 0, W - 1)
    xt = pt[:, hp, :, :]
    xb = pb[:, hm, :, :]
    xl = plf[:, :, wpi, :]
    xr = pr[:, :, wmi, :]
    cat = jnp.concatenate([xt, xb, xr, xl], axis=-1)
    out = jnp.einsum("bhwc,oc->bhwo", cat, params["w_fuse"]) + params["b_fuse"]
    return jnp.transpose(out, (0, 3, 1, 2))


if __name__ == "__main__":
    # C=128 keeps the lane axis dense; H=W=32, step=2 -> TH=32 (full H), grid (2, 1).
    B, C, H, W, STEP = 2, 128, 32, 32, 2
    Cq = C // 4
    key = jax.random.PRNGKey(0)
    ks = jax.random.split(key, 13)
    x = jax.random.normal(ks[0], (B, C, H, W), jnp.float32)
    ws = 0.05
    params = {
        "gamma": 1.0 + 0.1 * jax.random.normal(ks[1], (C,), jnp.float32),
        "beta": 0.1 * jax.random.normal(ks[2], (C,), jnp.float32),
        "w_t": ws * jax.random.normal(ks[3], (Cq, C), jnp.float32),
        "b_t": ws * jax.random.normal(ks[4], (Cq,), jnp.float32),
        "w_b": ws * jax.random.normal(ks[5], (Cq, C), jnp.float32),
        "b_b": ws * jax.random.normal(ks[6], (Cq,), jnp.float32),
        "w_l": ws * jax.random.normal(ks[7], (Cq, C), jnp.float32),
        "b_l": ws * jax.random.normal(ks[8], (Cq,), jnp.float32),
        "w_r": ws * jax.random.normal(ks[9], (Cq, C), jnp.float32),
        "b_r": ws * jax.random.normal(ks[10], (Cq,), jnp.float32),
        "w_fuse": ws * jax.random.normal(ks[11], (C, C), jnp.float32),
        "b_fuse": ws * jax.random.normal(ks[12], (C,), jnp.float32),
    }

    out = jax.block_until_ready(shifted_pillars_forward(x, params, STEP))
    ref = jax.block_until_ready(reference_forward(x, params, STEP))
    # Tolerance accounts for bf16 MXU operands (f32 accumulation) and the
    # approximate-reciprocal erf-GELU in the kernel.
    np.testing.assert_allclose(np.asarray(out), np.asarray(ref),
                               atol=3e-2, rtol=3e-2)
    print("KERNEL_OK")
</pallas_src>

<mosaic_0001>
module attributes {stable_mosaic.version = 11 : i64} {
  func.func @_stats_kernel(%arg0: i32, %arg1: i32, %arg2: memref<1x32x32x128xf32, #tpu.memory_space<vmem>>, %arg3: memref<1x1x128xf32, #tpu.memory_space<vmem>>, %arg4: memref<1x1x128xf32, #tpu.memory_space<vmem>>) attributes {dimension_semantics = [#tpu.dimension_semantics<parallel>, #tpu.dimension_semantics<arbitrary>], iteration_bounds = array<i64: 2, 1>, scalar_prefetch = 0 : i64, scratch_operands = 0 : i64, tpu.core_type = #tpu.core_type<tc>, window_params = [{transform_indices = @transform_0, window_bounds = array<i64: 1, 32, 32, 128>}, {transform_indices = @transform_1, window_bounds = array<i64: 1, 1, 128>}, {transform_indices = @transform_2, window_bounds = array<i64: 1, 1, 128>}]} {
    %c0_i32 = arith.constant 0 : i32
    %0 = arith.cmpi eq, %arg1, %c0_i32 : i32
    %1 = arith.extui %0 : i1 to i32
    %c0_i32_0 = arith.constant 0 : i32
    %2 = arith.cmpi ne, %1, %c0_i32_0 : i32
    scf.if %2 {
      %cst_17 = arith.constant 0.000000e+00 : f32
      %18 = vector.broadcast %cst_17 : f32 to vector<1x1x128xf32>
      %c0_18 = arith.constant 0 : index
      %c0_19 = arith.constant 0 : index
      %c0_20 = arith.constant 0 : index
      %19 = vector.load %arg3[%c0_18, %c0_19, %c0_20] : memref<1x1x128xf32, #tpu.memory_space<vmem>>, vector<1x1x128xf32>
      tpu.vector_store %arg3[%c0_18, %c0_19, %c0_20], %18 {strides = array<i32>} : memref<1x1x128xf32, #tpu.memory_space<vmem>>, vector<1x1x128xf32>,
      %cst_21 = arith.constant 0.000000e+00 : f32
      %20 = vector.broadcast %cst_21 : f32 to vector<1x1x128xf32>
      %c0_22 = arith.constant 0 : index
      %c0_23 = arith.constant 0 : index
      %c0_24 = arith.constant 0 : index
      %21 = vector.load %arg4[%c0_22, %c0_23, %c0_24] : memref<1x1x128xf32, #tpu.memory_space<vmem>>, vector<1x1x128xf32>
      tpu.vector_store %arg4[%c0_22, %c0_23, %c0_24], %20 {strides = array<i32>} : memref<1x1x128xf32, #tpu.memory_space<vmem>>, vector<1x1x128xf32>,
    } else {
    }
    %c0 = arith.constant 0 : index
    %c0_1 = arith.constant 0 : index
    %c0_2 = arith.constant 0 : index
    %c0_3 = arith.constant 0 : index
    %3 = vector.load %arg2[%c0, %c0_1, %c0_2, %c0_3] : memref<1x32x32x128xf32, #tpu.memory_space<vmem>>, vector<1x32x32x128xf32>
    %4 = vector.shape_cast %3 : vector<1x32x32x128xf32> to vector<1024x128xf32>
    %c0_4 = arith.constant 0 : index
    %c0_5 = arith.constant 0 : index
    %c0_6 = arith.constant 0 : index
    %5 = vector.load %arg3[%c0_4, %c0_5, %c0_6] : memref<1x1x128xf32, #tpu.memory_space<vmem>>, vector<1x1x128xf32>
    %cst = arith.constant dense<0.000000e+00> : vector<128xf32>
    %6 = vector.multi_reduction <add>, %4, %cst [0] : vector<1024x128xf32> to vector<128xf32>
    %7 = vector.shape_cast %6 : vector<128xf32> to vector<1x128xf32>
    %8 = vector.shape_cast %7 : vector<1x128xf32> to vector<1x1x128xf32>
    %9 = arith.addf %5, %8 : vector<1x1x128xf32>
    %c0_7 = arith.constant 0 : index
    %c0_8 = arith.constant 0 : index
    %c0_9 = arith.constant 0 : index
    %10 = vector.load %arg3[%c0_7, %c0_8, %c0_9] : memref<1x1x128xf32, #tpu.memory_space<vmem>>, vector<1x1x128xf32>
    tpu.vector_store %arg3[%c0_7, %c0_8, %c0_9], %9 {strides = array<i32>} : memref<1x1x128xf32, #tpu.memory_space<vmem>>, vector<1x1x128xf32>,
    %c0_10 = arith.constant 0 : index
    %c0_11 = arith.constant 0 : index
    %c0_12 = arith.constant 0 : index
    %11 = vector.load %arg4[%c0_10, %c0_11, %c0_12] : memref<1x1x128xf32, #tpu.memory_space<vmem>>, vector<1x1x128xf32>
    %12 = arith.mulf %4, %4 : vector<1024x128xf32>
    %cst_13 = arith.constant dense<0.000000e+00> : vector<128xf32>
    %13 = vector.multi_reduction <add>, %12, %cst_13 [0] : vector<1024x128xf32> to vector<128xf32>
    %14 = vector.shape_cast %13 : vector<128xf32> to vector<1x128xf32>
    %15 = vector.shape_cast %14 : vector<1x128xf32> to vector<1x1x128xf32>
    %16 = arith.addf %11, %15 : vector<1x1x128xf32>
    %c0_14 = arith.constant 0 : index
    %c0_15 = arith.constant 0 : index
    %c0_16 = arith.constant 0 : index
    %17 = vector.load %arg4[%c0_14, %c0_15, %c0_16] : memref<1x1x128xf32, #tpu.memory_space<vmem>>, vector<1x1x128xf32>
    tpu.vector_store %arg4[%c0_14, %c0_15, %c0_16], %16 {strides = array<i32>} : memref<1x1x128xf32, #tpu.memory_space<vmem>>, vector<1x1x128xf32>,
    return
  }
  func.func @transform_0(%arg0: i32, %arg1: i32) -> (i32, i32, i32, i32) {
    %c0_i32 = arith.constant 0 : i32
    %c0_i32_0 = arith.constant 0 : i32
    %c0_i32_1 = arith.constant 0 : i32
    return %arg0, %arg1, %c0_i32, %c0_i32_0 : i32, i32, i32, i32
  }
  func.func @transform_1(%arg0: i32, %arg1: i32) -> (i32, i32, i32) {
    %c0_i32 = arith.constant 0 : i32
    %c0_i32_0 = arith.constant 0 : i32
    %c0_i32_1 = arith.constant 0 : i32
    return %arg0, %c0_i32, %c0_i32_0 : i32, i32, i32
  }
  func.func @transform_2(%arg0: i32, %arg1: i32) -> (i32, i32, i32) {
    %c0_i32 = arith.constant 0 : i32
    %c0_i32_0 = arith.constant 0 : i32
    %c0_i32_1 = arith.constant 0 : i32
    return %arg0, %c0_i32, %c0_i32_0 : i32, i32, i32
  }
}

</mosaic_0001>

<bundles_post_ra>
// kernel: tpu_custom_call.1
= control target key start
LH: loop header
LB: loop body
LE: loop exit
PB: predicated region body
PF: predicated region fallthrough
CT: control target
= control target key end

     0   :  { %8 = vsyncpa [#allocation3], 0  ;;  %s1398_s0 = inlined_call_operand.hbm [shape: f32[2,32,32,128], index: 0, kind: input, shape index: {}]   ;;  %s1399_s1 = inlined_call_operand.hbm [shape: f32[2,1,128], index: 1, kind: output, shape index: {0}]   ;;  %s1400_s2 = inlined_call_operand.hbm [shape: f32[2,1,128], index: 2, kind: output, shape index: {1}]  }
   0x1   :  { %10 = vsyncpa [#allocation3 + $0x1], 0 }
   0x2   :  { %11 = vsyncpa [#allocation4], 0 }
   0x3   :  { %13 = vsyncpa [#allocation4 + $0x1], 0 }
   0x4   :  { %14 = vsyncpa [#allocation7], 0 }
   0x5   :  { %16 = vsyncpa [#allocation7 + $0x1], 0  ;;  %s1106_s9 = smov 0   ;;  %s1108_s10 = smov 0  }
   0x6   :  { %s1110_s11 = smov 0   ;;  %s1112_s12 = smov 0  }
   0x7   :  { %s1114_s13 = smov 0   ;;  %s1116_s14 = smov 0  }
   0x8 LB: > { %s860_s15 = sadd.s32 4294967295, %s1086_s14   ;;  %s861_s16 = sadd.s32 4294967294, %s1086_s14   ;;  %s1086_s14 = sphi %s1116_s14, %s22_s14   ;;  %s1082_s13 = sphi %s1114_s13, %s1409_s13   ;;  %s1078_s12 = sphi %s1112_s12, %s1408_s12   ;;  %s1074_s11 = sphi %s1110_s11, %s1407_s11   ;;  %s1070_s10 = sphi %s1108_s10, %s1406_s10   ;;  %s1066_s9 = sphi %s1106_s9, %s1405_s9  }
   0x9   : > { %s34_s17 = sadd.s32 1, %s1082_s13  ;;  %s43_s18 = sadd.s32 1, %s1074_s11 }
   0xa   : > { %p36_p0 = scmp.ge.s32.totalorder %s34_s17, 2  ;;  %p50_p1 = scmp.ne.s32.totalorder %s1074_s11, %s1070_s10 }
   0xb   : > { %p51_p2 = scmp.eq.s32.totalorder %s1086_s14, 0  ;;  %p56_p3 = scmp.ne.s32.totalorder %s1070_s10, %s1066_s9 }
   0xc   : > { %s1411_s17 = smov (%p36_p0, %s34_s17), 0  ;;  %p57_p5 = scmp.eq.s32.totalorder %s860_s15, 0 }
   0xd   : > { %p1147_p4 = por %p51_p2, %p50_p1  ;;  %s38_s20 = ssub.s32 %s1082_s13, %s1411_s17 }
   0xe   : > { %p80_p6 = scmp.eq.s32.totalorder %s860_s15, 1  ;;  %p41_p7 = scmp.eq.s32.totalorder %s38_s20, 0 }
   0xf   : > { %p1153_p8 = por %p57_p5, %p56_p3  ;;  %p86_p10 = scmp.eq.s32.totalorder %s861_s16, 1 }
  0x10   : > { %p1157_p9 = por %p80_p6, %p50_p1  ;;  %p863_p12 = scmp.ge.s32.totalorder %s1086_s14, 2 }
  0x11   : > { %s1162_s23 = scalar_select %p41_p7, %s1074_s11, %s43_s18  }
  0x12   : > { %p1164_p11 = por %p86_p10, %p56_p3  ;;  %p889_p13 = scmp.lt.s32.totalorder %s1086_s14, 2 }
  0x13   : > { %s132_s25 = sand.u32 1, %s1074_s11   ;;  %s871_s27 = sshll.u32 %s1082_s13, 10 }
  0x14   : > { %s864_s26 = sshll.u32 %s132_s25, 10  ;;  %s144_s30 = scalar_lea.hbm %s1398_s0, %s871_s27 }
  0x15   : > { %s136_s3 = scalar_lea.vmem [#allocation2], %s864_s26  ;;  %s145_s5 = sshll.u32 %s144_s30, 4  ;;  %s146_s5 = int_to_ptr.hbm [resolvable:$true] %s145_s5 }
  0x16   : > { %s147_s4 = sshll.u32 %s136_s3, 4  ;;  %p879_p0 = pnand %p889_p13, %p1147_p4  ;;  %s148_s4 = int_to_ptr.vmem [resolvable:$true] %s147_s4 }
  0x17   : > { %p867_p1 = scmp.ge.s32.totalorder %s1086_s14, 1  ;;  %s133_s6 = scalar_lea.sflag [#allocation3], %s132_s25 }
  0x18   : > { %s1088_s7 = smov 128   ;;  %s1089_s8 = smov 8  }
  0x19   : > { %881 = dma.hbm_to_vmem [thread:$0]  (!%p879_p0), %s146_s5, 16384, %s148_s4, %s133_s6, %s1088_s7, %s1088_s7, %s1089_s8  }
  0x1a   : > { %p155_p2 = scmp.lt.s32.totalorder %s1086_s14, 3 }
  0x1c   : > { %p156_p3 = pnand %p867_p1, %p155_p2 }
  0x1d   : > { %s1180_s15 = sand.u32 (!%p156_p3), 1, %s1070_s10  }
  0x1e   : > { %159 = sbr.rel (%p156_p3) target bundleno = 320 (0x140), region = 24  ;;  %s868_s16 = sshll.u32 (!%p156_p3), %s1180_s15, 10 }
  0x1f   : > { %s162_s18 = scalar_lea.sflag (!%p156_p3), [#allocation3], %s1180_s15  ;;  %s1184_s20 = scalar_lea.vmem (!%p156_p3), [#allocation2], %s868_s16 }
  0x23   : > { %1053 = dma.done.wait (%p1153_p8), %s162_s18, 16384  }
  0x24   : > { %1055 = vsyncadd (%p1153_p8), %s162_s18, 4294950912  ;;  %s1191_s19 = scalar_lea.vmem [#allocation5], %s1180_s15  ;;  %v1090_v0 = vmov 0.0   ;;  %s1195_s25 = scalar_lea.vmem [#allocation6], %s1180_s15  ;;  %v197_v1 = vld [vmem:[%s1184_s20] sm:$0xff]  ;;  %v198_v2 = vld [vmem:[%s1184_s20 + $0x8] sm:$0xff] }
  0x25   : > { %195 = vst [vmem:[%s1191_s19] sm:$0x1] %v1090_v0  ;;  %v199_v3 = vld [vmem:[%s1184_s20 + $0x10] sm:$0xff]  ;;  %v200_v4 = vld [vmem:[%s1184_s20 + $0x18] sm:$0xff]  ;;  %v326_v5 = vadd.f32 %v198_v2, %v197_v1  ;;  %v462_v6 = vmul.f32 %v197_v1, %v197_v1  ;;  %v463_v7 = vmul.f32 %v198_v2, %v198_v2  ;;  %v201_v9 = vld [vmem:[%s1184_s20 + $0x20] sm:$0xff]  ;;  %s738_s27 = scalar_lea.hbm %s1399_s1, %s1078_s12  ;;  %s751_s30 = scalar_lea.hbm %s1400_s2, %s1078_s12 }
  0x26   : > { %196 = vst [vmem:[%s1195_s25] sm:$0x1] %v1090_v0  ;;  %v464_v8 = vmul.f32 %v199_v3, %v199_v3  ;;  %v465_v11 = vmul.f32 %v200_v4, %v200_v4  ;;  %v202_v13 = vld [vmem:[%s1184_s20 + $0x28] sm:$0xff]  ;;  %v466_v15 = vmul.f32 %v201_v9, %v201_v9  ;;  %v203_v17 = vld [vmem:[%s1184_s20 + $0x30] sm:$0xff]  ;;  %v204_v21 = vld [vmem:[%s1184_s20 + $0x38] sm:$0xff]  ;;  %s740_s3 = sshll.u32 %s1191_s19, 4  ;;  %s1336_s4 = sshll.u32 %s738_s27, 4  ;;  %s741_s3 = int_to_ptr.vmem [resolvable:$true] %s740_s3  ;;  %s743_s4 = int_to_ptr.hbm [resolvable:$true] %s1336_s4 }
  0x27   : > { %v327_v10 = vadd.f32 %v326_v5, %v199_v3  ;;  %v590_v12 = vadd.f32 %v463_v7, %v462_v6  ;;  %v467_v19 = vmul.f32 %v202_v13, %v202_v13  ;;  %v468_v23 = vmul.f32 %v203_v17, %v203_v17  ;;  %v205_v25 = vld [vmem:[%s1184_s20 + $0x40] sm:$0xff]  ;;  %v206_v29 = vld [vmem:[%s1184_s20 + $0x48] sm:$0xff]  ;;  %v207_v33 = vld [vmem:[%s1184_s20 + $0x50] sm:$0xff]  ;;  %s753_s5 = sshll.u32 %s1195_s25, 4  ;;  %s1339_s6 = sshll.u32 %s751_s30, 4  ;;  %s1344_s5 = int_to_ptr.vmem [resolvable:$true] %s753_s5  ;;  %s756_s6 = int_to_ptr.hbm [resolvable:$true] %s1339_s6 }
  0x28   : > { %v469_v27 = vmul.f32 %v204_v21, %v204_v21  ;;  %v470_v31 = vmul.f32 %v205_v25, %v205_v25  ;;  %v471_v35 = vmul.f32 %v206_v29, %v206_v29  ;;  %v208_v37 = vld [vmem:[%s1184_s20 + $0x58] sm:$0xff]  ;;  %v472_v39 = vmul.f32 %v207_v33, %v207_v33  ;;  %v209_v41 = vld [vmem:[%s1184_s20 + $0x60] sm:$0xff]  ;;  %v210_v45 = vld [vmem:[%s1184_s20 + $0x68] sm:$0xff]  ;;  %s726_s12 = scalar_lea.sflag [#allocation4], %s1180_s15  ;;  %s986_s7 = sshra.s32 %s743_s4, 4  ;;  %s987_s7 = int_to_ptr.hbm [resolvable:$true] %s986_s7 }
  0x29   : > { %v328_v14 = vadd.f32 %v327_v10, %v200_v4  ;;  %v591_v16 = vadd.f32 %v590_v12, %v464_v8  ;;  %v473_v43 = vmul.f32 %v208_v37, %v208_v37  ;;  %v474_v47 = vmul.f32 %v209_v41, %v209_v41  ;;  %v211_v49 = vld [vmem:[%s1184_s20 + $0x70] sm:$0xff]  ;;  %v212_v53 = vld [vmem:[%s1184_s20 + $0x78] sm:$0xff]  ;;  %v213_v57 = vld [vmem:[%s1184_s20 + $0x80] sm:$0xff]  ;;  %s988_s8 = scalar_lea.hbm %s987_s7, 1  ;;  %p993_p7 = scmp.lt.s32.totalorder %s987_s7, %s1399_s1 }
  0x2a   : > { %v475_v51 = vmul.f32 %v210_v45, %v210_v45  ;;  %v476_v55 = vmul.f32 %v211_v49, %v211_v49  ;;  %v477_v59 = vmul.f32 %v212_v53, %v212_v53  ;;  %v214_v61 = vld [vmem:[%s1184_s20 + $0x88] sm:$0xff]  ;;  %v478_v63 = vmul.f32 %v213_v57, %v213_v57  ;;  %v215_v1 = vld [vmem:[%s1184_s20 + $0x90] sm:$0xff]  ;;  %v216_v5 = vld [vmem:[%s1184_s20 + $0x98] sm:$0xff]  ;;  %p989_p4 = scmp.ne.s32.totalorder %s987_s7, %s988_s8 }
  0x2b   : > { %v329_v18 = vadd.f32 %v328_v14, %v201_v9  ;;  %v592_v20 = vadd.f32 %v591_v16, %v465_v11  ;;  %v479_v3 = vmul.f32 %v214_v61, %v214_v61  ;;  %v480_v7 = vmul.f32 %v215_v1, %v215_v1  ;;  %v217_v9 = vld [vmem:[%s1184_s20 + $0xa0] sm:$0xff] }
  0x2c   : > { %v481_v11 = vmul.f32 %v216_v5, %v216_v5  ;;  %p990_p5 = pnand %p989_p4, %p1157_p9 }
  0x2d   : > { %v330_v22 = vadd.f32 %v329_v18, %v202_v13  ;;  %v593_v24 = vadd.f32 %v592_v20, %v466_v15  ;;  %v218_v13 = vld [vmem:[%s1184_s20 + $0xa8] sm:$0xff]  ;;  %v482_v15 = vmul.f32 %v217_v9, %v217_v9 }
  0x2e   : > { %p991_p6 = pneg %p990_p5 }
  0x2f   : > { %v331_v26 = vadd.f32 %v330_v22, %v203_v17  ;;  %v594_v28 = vadd.f32 %v593_v24, %v467_v19  ;;  %v219_v17 = vld [vmem:[%s1184_s20 + $0xb0] sm:$0xff]  ;;  %v483_v19 = vmul.f32 %v218_v13, %v218_v13 }
  0x31   : > { %v332_v30 = vadd.f32 %v331_v26, %v204_v21  ;;  %v595_v32 = vadd.f32 %v594_v28, %v468_v23  ;;  %v220_v21 = vld [vmem:[%s1184_s20 + $0xb8] sm:$0xff]  ;;  %v484_v23 = vmul.f32 %v219_v17, %v219_v17 }
  0x33   : > { %v333_v34 = vadd.f32 %v332_v30, %v205_v25  ;;  %v596_v36 = vadd.f32 %v595_v32, %v469_v27  ;;  %v221_v25 = vld [vmem:[%s1184_s20 + $0xc0] sm:$0xff]  ;;  %v485_v27 = vmul.f32 %v220_v21, %v220_v21 }
  0x35   : > { %v334_v38 = vadd.f32 %v333_v34, %v206_v29  ;;  %v597_v40 = vadd.f32 %v596_v36, %v470_v31  ;;  %v222_v29 = vld [vmem:[%s1184_s20 + $0xc8] sm:$0xff]  ;;  %v486_v31 = vmul.f32 %v221_v25, %v221_v25 }
  0x37   : > { %v335_v42 = vadd.f32 %v334_v38, %v207_v33  ;;  %v598_v44 = vadd.f32 %v597_v40, %v471_v35  ;;  %v223_v33 = vld [vmem:[%s1184_s20 + $0xd0] sm:$0xff]  ;;  %v487_v35 = vmul.f32 %v222_v29, %v222_v29 }
  0x39   : > { %v336_v46 = vadd.f32 %v335_v42, %v208_v37  ;;  %v599_v48 = vadd.f32 %v598_v44, %v472_v39  ;;  %v224_v37 = vld [vmem:[%s1184_s20 + $0xd8] sm:$0xff]  ;;  %v488_v39 = vmul.f32 %v223_v33, %v223_v33 }
  0x3b   : > { %v337_v50 = vadd.f32 %v336_v46, %v209_v41  ;;  %v600_v52 = vadd.f32 %v599_v48, %v473_v43  ;;  %v225_v41 = vld [vmem:[%s1184_s20 + $0xe0] sm:$0xff]  ;;  %v489_v43 = vmul.f32 %v224_v37, %v224_v37 }
  0x3d   : > { %v338_v54 = vadd.f32 %v337_v50, %v210_v45  ;;  %v601_v56 = vadd.f32 %v600_v52, %v474_v47  ;;  %v226_v45 = vld [vmem:[%s1184_s20 + $0xe8] sm:$0xff]  ;;  %v490_v47 = vmul.f32 %v225_v41, %v225_v41 }
  0x3f   : > { %v339_v58 = vadd.f32 %v338_v54, %v211_v49  ;;  %v602_v60 = vadd.f32 %v601_v56, %v475_v51  ;;  %v227_v49 = vld [vmem:[%s1184_s20 + $0xf0] sm:$0xff]  ;;  %v491_v51 = vmul.f32 %v226_v45, %v226_v45 }
  0x41   : > { %v340_v62 = vadd.f32 %v339_v58, %v212_v53  ;;  %v603_v0 = vadd.f32 %v602_v60, %v476_v55  ;;  %v228_v53 = vld [vmem:[%s1184_s20 + $0xf8] sm:$0xff]  ;;  %v492_v55 = vmul.f32 %v227_v49, %v227_v49 }
  0x43   : > { %v341_v2 = vadd.f32 %v340_v62, %v213_v57  ;;  %v604_v4 = vadd.f32 %v603_v0, %v477_v59  ;;  %v229_v57 = vld [vmem:[%s1184_s20 + $0x100] sm:$0xff]  ;;  %v493_v59 = vmul.f32 %v228_v53, %v228_v53 }
  0x45   : > { %v342_v6 = vadd.f32 %v341_v2, %v214_v61  ;;  %v605_v8 = vadd.f32 %v604_v4, %v478_v63  ;;  %v230_v61 = vld [vmem:[%s1184_s20 + $0x108] sm:$0xff]  ;;  %v494_v63 = vmul.f32 %v229_v57, %v229_v57 }
  0x47   : > { %v343_v10 = vadd.f32 %v342_v6, %v215_v1  ;;  %v606_v12 = vadd.f32 %v605_v8, %v479_v3  ;;  %v231_v1 = vld [vmem:[%s1184_s20 + $0x110] sm:$0xff]  ;;  %v495_v3 = vmul.f32 %v230_v61, %v230_v61 }
  0x49   : > { %v344_v14 = vadd.f32 %v343_v10, %v216_v5  ;;  %v607_v16 = vadd.f32 %v606_v12, %v480_v7  ;;  %v232_v5 = vld [vmem:[%s1184_s20 + $0x118] sm:$0xff]  ;;  %v496_v7 = vmul.f32 %v231_v1, %v231_v1 }
  0x4b   : > { %v345_v18 = vadd.f32 %v344_v14, %v217_v9  ;;  %v608_v20 = vadd.f32 %v607_v16, %v481_v11  ;;  %v233_v9 = vld [vmem:[%s1184_s20 + $0x120] sm:$0xff]  ;;  %v497_v11 = vmul.f32 %v232_v5, %v232_v5 }
  0x4d   : > { %v346_v22 = vadd.f32 %v345_v18, %v218_v13  ;;  %v609_v24 = vadd.f32 %v608_v20, %v482_v15  ;;  %v234_v13 = vld [vmem:[%s1184_s20 + $0x128] sm:$0xff]  ;;  %v498_v15 = vmul.f32 %v233_v9, %v233_v9 }
  0x4f   : > { %v347_v26 = vadd.f32 %v346_v22, %v219_v17  ;;  %v610_v28 = vadd.f32 %v609_v24, %v483_v19  ;;  %v235_v17 = vld [vmem:[%s1184_s20 + $0x130] sm:$0xff]  ;;  %v499_v19 = vmul.f32 %v234_v13, %v234_v13 }
  0x51   : > { %v348_v30 = vadd.f32 %v347_v26, %v220_v21  ;;  %v611_v32 = vadd.f32 %v610_v28, %v484_v23  ;;  %v236_v21 = vld [vmem:[%s1184_s20 + $0x138] sm:$0xff]  ;;  %v500_v23 = vmul.f32 %v235_v17, %v235_v17 }
  0x53   : > { %v349_v34 = vadd.f32 %v348_v30, %v221_v25  ;;  %v612_v36 = vadd.f32 %v611_v32, %v485_v27  ;;  %v237_v25 = vld [vmem:[%s1184_s20 + $0x140] sm:$0xff]  ;;  %v501_v27 = vmul.f32 %v236_v21, %v236_v21 }
  0x55   : > { %v350_v38 = vadd.f32 %v349_v34, %v222_v29  ;;  %v613_v40 = vadd.f32 %v612_v36, %v486_v31  ;;  %v238_v29 = vld [vmem:[%s1184_s20 + $0x148] sm:$0xff]  ;;  %v502_v31 = vmul.f32 %v237_v25, %v237_v25 }
  0x57   : > { %v351_v42 = vadd.f32 %v350_v38, %v223_v33  ;;  %v614_v44 = vadd.f32 %v613_v40, %v487_v35  ;;  %v239_v33 = vld [vmem:[%s1184_s20 + $0x150] sm:$0xff]  ;;  %v503_v35 = vmul.f32 %v238_v29, %v238_v29 }
  0x59   : > { %v352_v46 = vadd.f32 %v351_v42, %v224_v37  ;;  %v615_v48 = vadd.f32 %v614_v44, %v488_v39  ;;  %v240_v37 = vld [vmem:[%s1184_s20 + $0x158] sm:$0xff]  ;;  %v504_v39 = vmul.f32 %v239_v33, %v239_v33 }
  0x5b   : > { %v353_v50 = vadd.f32 %v352_v46, %v225_v41  ;;  %v616_v52 = vadd.f32 %v615_v48, %v489_v43  ;;  %v241_v41 = vld [vmem:[%s1184_s20 + $0x160] sm:$0xff]  ;;  %v505_v43 = vmul.f32 %v240_v37, %v240_v37 }
  0x5d   : > { %v354_v54 = vadd.f32 %v353_v50, %v226_v45  ;;  %v617_v56 = vadd.f32 %v616_v52, %v490_v47  ;;  %v242_v45 = vld [vmem:[%s1184_s20 + $0x168] sm:$0xff]  ;;  %v506_v47 = vmul.f32 %v241_v41, %v241_v41 }
  0x5f   : > { %v355_v58 = vadd.f32 %v354_v54, %v227_v49  ;;  %v618_v60 = vadd.f32 %v617_v56, %v491_v51  ;;  %v243_v49 = vld [vmem:[%s1184_s20 + $0x170] sm:$0xff]  ;;  %v507_v51 = vmul.f32 %v242_v45, %v242_v45 }
  0x61   : > { %v356_v62 = vadd.f32 %v355_v58, %v228_v53  ;;  %v619_v0 = vadd.f32 %v618_v60, %v492_v55  ;;  %v244_v53 = vld [vmem:[%s1184_s20 + $0x178] sm:$0xff]  ;;  %v508_v55 = vmul.f32 %v243_v49, %v243_v49 }
  0x63   : > { %v357_v2 = vadd.f32 %v356_v62, %v229_v57  ;;  %v620_v4 = vadd.f32 %v619_v0, %v493_v59  ;;  %v245_v57 = vld [vmem:[%s1184_s20 + $0x180] sm:$0xff]  ;;  %v509_v59 = vmul.f32 %v244_v53, %v244_v53 }
  0x65   : > { %v358_v6 = vadd.f32 %v357_v2, %v230_v61  ;;  %v621_v8 = vadd.f32 %v620_v4, %v494_v63  ;;  %v246_v61 = vld [vmem:[%s1184_s20 + $0x188] sm:$0xff]  ;;  %v510_v63 = vmul.f32 %v245_v57, %v245_v57 }
  0x67   : > { %v359_v10 = vadd.f32 %v358_v6, %v231_v1  ;;  %v622_v12 = vadd.f32 %v621_v8, %v495_v3  ;;  %v247_v1 = vld [vmem:[%s1184_s20 + $0x190] sm:$0xff]  ;;  %v511_v3 = vmul.f32 %v246_v61, %v246_v61 }
  0x69   : > { %v360_v14 = vadd.f32 %v359_v10, %v232_v5  ;;  %v623_v16 = vadd.f32 %v622_v12, %v496_v7  ;;  %v248_v5 = vld [vmem:[%s1184_s20 + $0x198] sm:$0xff]  ;;  %v512_v7 = vmul.f32 %v247_v1, %v247_v1 }
  0x6b   : > { %v361_v18 = vadd.f32 %v360_v14, %v233_v9  ;;  %v624_v20 = vadd.f32 %v623_v16, %v497_v11  ;;  %v249_v9 = vld [vmem:[%s1184_s20 + $0x1a0] sm:$0xff]  ;;  %v513_v11 = vmul.f32 %v248_v5, %v248_v5 }
  0x6d   : > { %v362_v22 = vadd.f32 %v361_v18, %v234_v13  ;;  %v625_v24 = vadd.f32 %v624_v20, %v498_v15  ;;  %v250_v13 = vld [vmem:[%s1184_s20 + $0x1a8] sm:$0xff]  ;;  %v514_v15 = vmul.f32 %v249_v9, %v249_v9 }
  0x6f   : > { %v363_v26 = vadd.f32 %v362_v22, %v235_v17  ;;  %v626_v28 = vadd.f32 %v625_v24, %v499_v19  ;;  %v251_v17 = vld [vmem:[%s1184_s20 + $0x1b0] sm:$0xff]  ;;  %v515_v19 = vmul.f32 %v250_v13, %v250_v13 }
  0x71   : > { %v364_v30 = vadd.f32 %v363_v26, %v236_v21  ;;  %v627_v32 = vadd.f32 %v626_v28, %v500_v23  ;;  %v252_v21 = vld [vmem:[%s1184_s20 + $0x1b8] sm:$0xff]  ;;  %v516_v23 = vmul.f32 %v251_v17, %v251_v17 }
  0x73   : > { %v365_v34 = vadd.f32 %v364_v30, %v237_v25  ;;  %v628_v36 = vadd.f32 %v627_v32, %v501_v27  ;;  %v253_v25 = vld [vmem:[%s1184_s20 + $0x1c0] sm:$0xff]  ;;  %v517_v27 = vmul.f32 %v252_v21, %v252_v21 }
  0x75   : > { %v366_v38 = vadd.f32 %v365_v34, %v238_v29  ;;  %v629_v40 = vadd.f32 %v628_v36, %v502_v31  ;;  %v254_v29 = vld [vmem:[%s1184_s20 + $0x1c8] sm:$0xff]  ;;  %v518_v31 = vmul.f32 %v253_v25, %v253_v25 }
  0x77   : > { %v367_v42 = vadd.f32 %v366_v38, %v239_v33  ;;  %v630_v44 = vadd.f32 %v629_v40, %v503_v35  ;;  %v255_v33 = vld [vmem:[%s1184_s20 + $0x1d0] sm:$0xff]  ;;  %v519_v35 = vmul.f32 %v254_v29, %v254_v29 }
  0x79   : > { %v368_v46 = vadd.f32 %v367_v42, %v240_v37  ;;  %v631_v48 = vadd.f32 %v630_v44, %v504_v39  ;;  %v256_v37 = vld [vmem:[%s1184_s20 + $0x1d8] sm:$0xff]  ;;  %v520_v39 = vmul.f32 %v255_v33, %v255_v33 }
  0x7b   : > { %v369_v50 = vadd.f32 %v368_v46, %v241_v41  ;;  %v632_v52 = vadd.f32 %v631_v48, %v505_v43  ;;  %v257_v41 = vld [vmem:[%s1184_s20 + $0x1e0] sm:$0xff]  ;;  %v521_v43 = vmul.f32 %v256_v37, %v256_v37 }
  0x7d   : > { %v370_v54 = vadd.f32 %v369_v50, %v242_v45  ;;  %v633_v56 = vadd.f32 %v632_v52, %v506_v47  ;;  %v258_v45 = vld [vmem:[%s1184_s20 + $0x1e8] sm:$0xff]  ;;  %v522_v47 = vmul.f32 %v257_v41, %v257_v41 }
  0x7f   : > { %v371_v58 = vadd.f32 %v370_v54, %v243_v49  ;;  %v634_v60 = vadd.f32 %v633_v56, %v507_v51  ;;  %v259_v49 = vld [vmem:[%s1184_s20 + $0x1f0] sm:$0xff]  ;;  %v523_v51 = vmul.f32 %v258_v45, %v258_v45 }
  0x81   : > { %v372_v62 = vadd.f32 %v371_v58, %v244_v53  ;;  %v635_v0 = vadd.f32 %v634_v60, %v508_v55  ;;  %v260_v53 = vld [vmem:[%s1184_s20 + $0x1f8] sm:$0xff]  ;;  %v524_v55 = vmul.f32 %v259_v49, %v259_v49 }
  0x83   : > { %v373_v2 = vadd.f32 %v372_v62, %v245_v57  ;;  %v636_v4 = vadd.f32 %v635_v0, %v509_v59  ;;  %v261_v57 = vld [vmem:[%s1184_s20 + $0x200] sm:$0xff]  ;;  %v525_v59 = vmul.f32 %v260_v53, %v260_v53 }
  0x85   : > { %v374_v6 = vadd.f32 %v373_v2, %v246_v61  ;;  %v637_v8 = vadd.f32 %v636_v4, %v510_v63  ;;  %v262_v61 = vld [vmem:[%s1184_s20 + $0x208] sm:$0xff]  ;;  %v526_v63 = vmul.f32 %v261_v57, %v261_v57 }
  0x87   : > { %v375_v10 = vadd.f32 %v374_v6, %v247_v1  ;;  %v638_v12 = vadd.f32 %v637_v8, %v511_v3  ;;  %v263_v1 = vld [vmem:[%s1184_s20 + $0x210] sm:$0xff]  ;;  %v527_v3 = vmul.f32 %v262_v61, %v262_v61 }
  0x89   : > { %v376_v14 = vadd.f32 %v375_v10, %v248_v5  ;;  %v639_v16 = vadd.f32 %v638_v12, %v512_v7  ;;  %v264_v5 = vld [vmem:[%s1184_s20 + $0x218] sm:$0xff]  ;;  %v528_v7 = vmul.f32 %v263_v1, %v263_v1 }
  0x8b   : > { %v377_v18 = vadd.f32 %v376_v14, %v249_v9  ;;  %v640_v20 = vadd.f32 %v639_v16, %v513_v11  ;;  %v265_v9 = vld [vmem:[%s1184_s20 + $0x220] sm:$0xff]  ;;  %v529_v11 = vmul.f32 %v264_v5, %v264_v5 }
  0x8d   : > { %v378_v22 = vadd.f32 %v377_v18, %v250_v13  ;;  %v641_v24 = vadd.f32 %v640_v20, %v514_v15  ;;  %v266_v13 = vld [vmem:[%s1184_s20 + $0x228] sm:$0xff]  ;;  %v530_v15 = vmul.f32 %v265_v9, %v265_v9 }
  0x8f   : > { %v379_v26 = vadd.f32 %v378_v22, %v251_v17  ;;  %v642_v28 = vadd.f32 %v641_v24, %v515_v19  ;;  %v267_v17 = vld [vmem:[%s1184_s20 + $0x230] sm:$0xff]  ;;  %v531_v19 = vmul.f32 %v266_v13, %v266_v13 }
  0x91   : > { %v380_v30 = vadd.f32 %v379_v26, %v252_v21  ;;  %v643_v32 = vadd.f32 %v642_v28, %v516_v23  ;;  %v268_v21 = vld [vmem:[%s1184_s20 + $0x238] sm:$0xff]  ;;  %v532_v23 = vmul.f32 %v267_v17, %v267_v17 }
  0x93   : > { %v381_v34 = vadd.f32 %v380_v30, %v253_v25  ;;  %v644_v36 = vadd.f32 %v643_v32, %v517_v27  ;;  %v269_v25 = vld [vmem:[%s1184_s20 + $0x240] sm:$0xff]  ;;  %v533_v27 = vmul.f32 %v268_v21, %v268_v21 }
  0x95   : > { %v382_v38 = vadd.f32 %v381_v34, %v254_v29  ;;  %v645_v40 = vadd.f32 %v644_v36, %v518_v31  ;;  %v270_v29 = vld [vmem:[%s1184_s20 + $0x248] sm:$0xff]  ;;  %v534_v31 = vmul.f32 %v269_v25, %v269_v25 }
  0x97   : > { %v383_v42 = vadd.f32 %v382_v38, %v255_v33  ;;  %v646_v44 = vadd.f32 %v645_v40, %v519_v35  ;;  %v271_v33 = vld [vmem:[%s1184_s20 + $0x250] sm:$0xff]  ;;  %v535_v35 = vmul.f32 %v270_v29, %v270_v29 }
  0x99   : > { %v384_v46 = vadd.f32 %v383_v42, %v256_v37  ;;  %v647_v48 = vadd.f32 %v646_v44, %v520_v39  ;;  %v272_v37 = vld [vmem:[%s1184_s20 + $0x258] sm:$0xff]  ;;  %v536_v39 = vmul.f32 %v271_v33, %v271_v33 }
  0x9b   : > { %v385_v50 = vadd.f32 %v384_v46, %v257_v41  ;;  %v648_v52 = vadd.f32 %v647_v48, %v521_v43  ;;  %v273_v41 = vld [vmem:[%s1184_s20 + $0x260] sm:$0xff]  ;;  %v537_v43 = vmul.f32 %v272_v37, %v272_v37 }
  0x9d   : > { %v386_v54 = vadd.f32 %v385_v50, %v258_v45  ;;  %v649_v56 = vadd.f32 %v648_v52, %v522_v47  ;;  %v274_v45 = vld [vmem:[%s1184_s20 + $0x268] sm:$0xff]  ;;  %v538_v47 = vmul.f32 %v273_v41, %v273_v41 }
  0x9f   : > { %v387_v58 = vadd.f32 %v386_v54, %v259_v49  ;;  %v650_v60 = vadd.f32 %v649_v56, %v523_v51  ;;  %v275_v49 = vld [vmem:[%s1184_s20 + $0x270] sm:$0xff]  ;;  %v539_v51 = vmul.f32 %v274_v45, %v274_v45 }
  0xa1   : > { %v388_v62 = vadd.f32 %v387_v58, %v260_v53  ;;  %v651_v0 = vadd.f32 %v650_v60, %v524_v55  ;;  %v276_v53 = vld [vmem:[%s1184_s20 + $0x278] sm:$0xff]  ;;  %v540_v55 = vmul.f32 %v275_v49, %v275_v49 }
  0xa3   : > { %v389_v2 = vadd.f32 %v388_v62, %v261_v57  ;;  %v652_v4 = vadd.f32 %v651_v0, %v525_v59  ;;  %v277_v57 = vld [vmem:[%s1184_s20 + $0x280] sm:$0xff]  ;;  %v541_v59 = vmul.f32 %v276_v53, %v276_v53 }
  0xa5   : > { %v390_v6 = vadd.f32 %v389_v2, %v262_v61  ;;  %v653_v8 = vadd.f32 %v652_v4, %v526_v63  ;;  %v278_v61 = vld [vmem:[%s1184_s20 + $0x288] sm:$0xff]  ;;  %v542_v63 = vmul.f32 %v277_v57, %v277_v57 }
  0xa7   : > { %v391_v10 = vadd.f32 %v390_v6, %v263_v1  ;;  %v654_v12 = vadd.f32 %v653_v8, %v527_v3  ;;  %v279_v1 = vld [vmem:[%s1184_s20 + $0x290] sm:$0xff]  ;;  %v543_v3 = vmul.f32 %v278_v61, %v278_v61 }
  0xa9   : > { %v392_v14 = vadd.f32 %v391_v10, %v264_v5  ;;  %v655_v16 = vadd.f32 %v654_v12, %v528_v7  ;;  %v280_v5 = vld [vmem:[%s1184_s20 + $0x298] sm:$0xff]  ;;  %v544_v7 = vmul.f32 %v279_v1, %v279_v1 }
  0xab   : > { %v393_v18 = vadd.f32 %v392_v14, %v265_v9  ;;  %v656_v20 = vadd.f32 %v655_v16, %v529_v11  ;;  %v281_v9 = vld [vmem:[%s1184_s20 + $0x2a0] sm:$0xff]  ;;  %v545_v11 = vmul.f32 %v280_v5, %v280_v5 }
  0xad   : > { %v394_v22 = vadd.f32 %v393_v18, %v266_v13  ;;  %v657_v24 = vadd.f32 %v656_v20, %v530_v15  ;;  %v282_v13 = vld [vmem:[%s1184_s20 + $0x2a8] sm:$0xff]  ;;  %v546_v15 = vmul.f32 %v281_v9, %v281_v9 }
  0xaf   : > { %v395_v26 = vadd.f32 %v394_v22, %v267_v17  ;;  %v658_v28 = vadd.f32 %v657_v24, %v531_v19  ;;  %v283_v17 = vld [vmem:[%s1184_s20 + $0x2b0] sm:$0xff]  ;;  %v547_v19 = vmul.f32 %v282_v13, %v282_v13 }
  0xb1   : > { %v396_v30 = vadd.f32 %v395_v26, %v268_v21  ;;  %v659_v32 = vadd.f32 %v658_v28, %v532_v23  ;;  %v284_v21 = vld [vmem:[%s1184_s20 + $0x2b8] sm:$0xff]  ;;  %v548_v23 = vmul.f32 %v283_v17, %v283_v17 }
  0xb3   : > { %v397_v34 = vadd.f32 %v396_v30, %v269_v25  ;;  %v660_v36 = vadd.f32 %v659_v32, %v533_v27  ;;  %v285_v25 = vld [vmem:[%s1184_s20 + $0x2c0] sm:$0xff]  ;;  %v549_v27 = vmul.f32 %v284_v21, %v284_v21 }
  0xb5   : > { %v398_v38 = vadd.f32 %v397_v34, %v270_v29  ;;  %v661_v40 = vadd.f32 %v660_v36, %v534_v31  ;;  %v286_v29 = vld [vmem:[%s1184_s20 + $0x2c8] sm:$0xff]  ;;  %v550_v31 = vmul.f32 %v285_v25, %v285_v25 }
  0xb7   : > { %v399_v42 = vadd.f32 %v398_v38, %v271_v33  ;;  %v662_v44 = vadd.f32 %v661_v40, %v535_v35  ;;  %v287_v33 = vld [vmem:[%s1184_s20 + $0x2d0] sm:$0xff]  ;;  %v551_v35 = vmul.f32 %v286_v29, %v286_v29 }
  0xb9   : > { %v400_v46 = vadd.f32 %v399_v42, %v272_v37  ;;  %v663_v48 = vadd.f32 %v662_v44, %v536_v39  ;;  %v288_v37 = vld [vmem:[%s1184_s20 + $0x2d8] sm:$0xff]  ;;  %v552_v39 = vmul.f32 %v287_v33, %v287_v33 }
  0xbb   : > { %v401_v50 = vadd.f32 %v400_v46, %v273_v41  ;;  %v664_v52 = vadd.f32 %v663_v48, %v537_v43  ;;  %v289_v41 = vld [vmem:[%s1184_s20 + $0x2e0] sm:$0xff]  ;;  %v553_v43 = vmul.f32 %v288_v37, %v288_v37 }
  0xbd   : > { %v402_v54 = vadd.f32 %v401_v50, %v274_v45  ;;  %v665_v56 = vadd.f32 %v664_v52, %v538_v47  ;;  %v290_v45 = vld [vmem:[%s1184_s20 + $0x2e8] sm:$0xff]  ;;  %v554_v47 = vmul.f32 %v289_v41, %v289_v41 }
  0xbf   : > { %v403_v58 = vadd.f32 %v402_v54, %v275_v49  ;;  %v666_v60 = vadd.f32 %v665_v56, %v539_v51  ;;  %v291_v49 = vld [vmem:[%s1184_s20 + $0x2f0] sm:$0xff]  ;;  %v555_v51 = vmul.f32 %v290_v45, %v290_v45 }
  0xc1   : > { %v404_v62 = vadd.f32 %v403_v58, %v276_v53  ;;  %v667_v0 = vadd.f32 %v666_v60, %v540_v55  ;;  %v292_v53 = vld [vmem:[%s1184_s20 + $0x2f8] sm:$0xff]  ;;  %v556_v55 = vmul.f32 %v291_v49, %v291_v49 }
  0xc3   : > { %v405_v2 = vadd.f32 %v404_v62, %v277_v57  ;;  %v668_v4 = vadd.f32 %v667_v0, %v541_v59  ;;  %v293_v57 = vld [vmem:[%s1184_s20 + $0x300] sm:$0xff]  ;;  %v557_v59 = vmul.f32 %v292_v53, %v292_v53 }
  0xc5   : > { %v406_v6 = vadd.f32 %v405_v2, %v278_v61  ;;  %v669_v8 = vadd.f32 %v668_v4, %v542_v63  ;;  %v294_v61 = vld [vmem:[%s1184_s20 + $0x308] sm:$0xff]  ;;  %v558_v63 = vmul.f32 %v293_v57, %v293_v57 }
  0xc7   : > { %v407_v10 = vadd.f32 %v406_v6, %v279_v1  ;;  %v670_v12 = vadd.f32 %v669_v8, %v543_v3  ;;  %v295_v1 = vld [vmem:[%s1184_s20 + $0x310] sm:$0xff]  ;;  %v559_v3 = vmul.f32 %v294_v61, %v294_v61 }
  0xc9   : > { %v408_v14 = vadd.f32 %v407_v10, %v280_v5  ;;  %v671_v16 = vadd.f32 %v670_v12, %v544_v7  ;;  %v296_v5 = vld [vmem:[%s1184_s20 + $0x318] sm:$0xff]  ;;  %v560_v7 = vmul.f32 %v295_v1, %v295_v1 }
  0xcb   : > { %v409_v18 = vadd.f32 %v408_v14, %v281_v9  ;;  %v672_v20 = vadd.f32 %v671_v16, %v545_v11  ;;  %v297_v9 = vld [vmem:[%s1184_s20 + $0x320] sm:$0xff]  ;;  %v561_v11 = vmul.f32 %v296_v5, %v296_v5 }
  0xcd   : > { %v410_v22 = vadd.f32 %v409_v18, %v282_v13  ;;  %v673_v24 = vadd.f32 %v672_v20, %v546_v15  ;;  %v298_v13 = vld [vmem:[%s1184_s20 + $0x328] sm:$0xff]  ;;  %v562_v15 = vmul.f32 %v297_v9, %v297_v9 }
  0xcf   : > { %v411_v26 = vadd.f32 %v410_v22, %v283_v17  ;;  %v674_v28 = vadd.f32 %v673_v24, %v547_v19  ;;  %v299_v17 = vld [vmem:[%s1184_s20 + $0x330] sm:$0xff]  ;;  %v563_v19 = vmul.f32 %v298_v13, %v298_v13 }
  0xd1   : > { %v412_v30 = vadd.f32 %v411_v26, %v284_v21  ;;  %v675_v32 = vadd.f32 %v674_v28, %v548_v23  ;;  %v300_v21 = vld [vmem:[%s1184_s20 + $0x338] sm:$0xff]  ;;  %v564_v23 = vmul.f32 %v299_v17, %v299_v17 }
  0xd3   : > { %v413_v34 = vadd.f32 %v412_v30, %v285_v25  ;;  %v676_v36 = vadd.f32 %v675_v32, %v549_v27  ;;  %v301_v25 = vld [vmem:[%s1184_s20 + $0x340] sm:$0xff]  ;;  %v565_v27 = vmul.f32 %v300_v21, %v300_v21 }
  0xd5   : > { %v414_v38 = vadd.f32 %v413_v34, %v286_v29  ;;  %v677_v40 = vadd.f32 %v676_v36, %v550_v31  ;;  %v302_v29 = vld [vmem:[%s1184_s20 + $0x348] sm:$0xff]  ;;  %v566_v31 = vmul.f32 %v301_v25, %v301_v25 }
  0xd7   : > { %v415_v42 = vadd.f32 %v414_v38, %v287_v33  ;;  %v678_v44 = vadd.f32 %v677_v40, %v551_v35  ;;  %v303_v33 = vld [vmem:[%s1184_s20 + $0x350] sm:$0xff]  ;;  %v567_v35 = vmul.f32 %v302_v29, %v302_v29 }
  0xd9   : > { %v416_v46 = vadd.f32 %v415_v42, %v288_v37  ;;  %v679_v48 = vadd.f32 %v678_v44, %v552_v39  ;;  %v304_v37 = vld [vmem:[%s1184_s20 + $0x358] sm:$0xff]  ;;  %v568_v39 = vmul.f32 %v303_v33, %v303_v33 }
  0xdb   : > { %v417_v50 = vadd.f32 %v416_v46, %v289_v41  ;;  %v680_v52 = vadd.f32 %v679_v48, %v553_v43  ;;  %v305_v41 = vld [vmem:[%s1184_s20 + $0x360] sm:$0xff]  ;;  %v569_v43 = vmul.f32 %v304_v37, %v304_v37 }
  0xdd   : > { %v418_v54 = vadd.f32 %v417_v50, %v290_v45  ;;  %v681_v56 = vadd.f32 %v680_v52, %v554_v47  ;;  %v306_v45 = vld [vmem:[%s1184_s20 + $0x368] sm:$0xff]  ;;  %v570_v47 = vmul.f32 %v305_v41, %v305_v41 }
  0xdf   : > { %v419_v58 = vadd.f32 %v418_v54, %v291_v49  ;;  %v682_v60 = vadd.f32 %v681_v56, %v555_v51  ;;  %v307_v49 = vld [vmem:[%s1184_s20 + $0x370] sm:$0xff]  ;;  %v571_v51 = vmul.f32 %v306_v45, %v306_v45 }
  0xe1   : > { %v420_v62 = vadd.f32 %v419_v58, %v292_v53  ;;  %v683_v0 = vadd.f32 %v682_v60, %v556_v55  ;;  %v308_v53 = vld [vmem:[%s1184_s20 + $0x378] sm:$0xff]  ;;  %v572_v55 = vmul.f32 %v307_v49, %v307_v49 }
  0xe3   : > { %v421_v2 = vadd.f32 %v420_v62, %v293_v57  ;;  %v684_v4 = vadd.f32 %v683_v0, %v557_v59  ;;  %v309_v57 = vld [vmem:[%s1184_s20 + $0x380] sm:$0xff]  ;;  %v573_v59 = vmul.f32 %v308_v53, %v308_v53 }
  0xe5   : > { %v422_v6 = vadd.f32 %v421_v2, %v294_v61  ;;  %v685_v8 = vadd.f32 %v684_v4, %v558_v63  ;;  %v310_v61 = vld [vmem:[%s1184_s20 + $0x388] sm:$0xff]  ;;  %v574_v63 = vmul.f32 %v309_v57, %v309_v57 }
  0xe7   : > { %v423_v10 = vadd.f32 %v422_v6, %v295_v1  ;;  %v686_v12 = vadd.f32 %v685_v8, %v559_v3  ;;  %v311_v1 = vld [vmem:[%s1184_s20 + $0x390] sm:$0xff]  ;;  %v575_v3 = vmul.f32 %v310_v61, %v310_v61 }
  0xe9   : > { %v424_v14 = vadd.f32 %v423_v10, %v296_v5  ;;  %v687_v16 = vadd.f32 %v686_v12, %v560_v7  ;;  %v312_v5 = vld [vmem:[%s1184_s20 + $0x398] sm:$0xff]  ;;  %v576_v7 = vmul.f32 %v311_v1, %v311_v1 }
  0xeb   : > { %v425_v18 = vadd.f32 %v424_v14, %v297_v9  ;;  %v688_v20 = vadd.f32 %v687_v16, %v561_v11  ;;  %v313_v9 = vld [vmem:[%s1184_s20 + $0x3a0] sm:$0xff]  ;;  %v577_v11 = vmul.f32 %v312_v5, %v312_v5 }
  0xed   : > { %v426_v22 = vadd.f32 %v425_v18, %v298_v13  ;;  %v689_v24 = vadd.f32 %v688_v20, %v562_v15  ;;  %v314_v13 = vld [vmem:[%s1184_s20 + $0x3a8] sm:$0xff]  ;;  %v578_v15 = vmul.f32 %v313_v9, %v313_v9 }
  0xef   : > { %v427_v26 = vadd.f32 %v426_v22, %v299_v17  ;;  %v690_v28 = vadd.f32 %v689_v24, %v563_v19  ;;  %v315_v17 = vld [vmem:[%s1184_s20 + $0x3b0] sm:$0xff]  ;;  %v579_v19 = vmul.f32 %v314_v13, %v314_v13 }
  0xf1   : > { %v428_v30 = vadd.f32 %v427_v26, %v300_v21  ;;  %v691_v32 = vadd.f32 %v690_v28, %v564_v23  ;;  %v316_v21 = vld [vmem:[%s1184_s20 + $0x3b8] sm:$0xff]  ;;  %v580_v23 = vmul.f32 %v315_v17, %v315_v17 }
  0xf3   : > { %v429_v34 = vadd.f32 %v428_v30, %v301_v25  ;;  %v692_v36 = vadd.f32 %v691_v32, %v565_v27  ;;  %v317_v25 = vld [vmem:[%s1184_s20 + $0x3c0] sm:$0xff]  ;;  %v581_v27 = vmul.f32 %v316_v21, %v316_v21 }
  0xf5   : > { %v430_v38 = vadd.f32 %v429_v34, %v302_v29  ;;  %v693_v40 = vadd.f32 %v692_v36, %v566_v31  ;;  %v318_v29 = vld [vmem:[%s1184_s20 + $0x3c8] sm:$0xff]  ;;  %v582_v31 = vmul.f32 %v317_v25, %v317_v25 }
  0xf7   : > { %v431_v42 = vadd.f32 %v430_v38, %v303_v33  ;;  %v694_v44 = vadd.f32 %v693_v40, %v567_v35  ;;  %v319_v33 = vld [vmem:[%s1184_s20 + $0x3d0] sm:$0xff]  ;;  %v583_v35 = vmul.f32 %v318_v29, %v318_v29 }
  0xf9   : > { %v432_v46 = vadd.f32 %v431_v42, %v304_v37  ;;  %v695_v48 = vadd.f32 %v694_v44, %v568_v39  ;;  %v320_v37 = vld [vmem:[%s1184_s20 + $0x3d8] sm:$0xff]  ;;  %v584_v39 = vmul.f32 %v319_v33, %v319_v33 }
  0xfb   : > { %v433_v50 = vadd.f32 %v432_v46, %v305_v41  ;;  %v696_v52 = vadd.f32 %v695_v48, %v569_v43  ;;  %v321_v41 = vld [vmem:[%s1184_s20 + $0x3e0] sm:$0xff]  ;;  %v585_v43 = vmul.f32 %v320_v37, %v320_v37 }
  0xfd   : > { %v434_v54 = vadd.f32 %v433_v50, %v306_v45  ;;  %v697_v56 = vadd.f32 %v696_v52, %v570_v47  ;;  %v322_v45 = vld [vmem:[%s1184_s20 + $0x3e8] sm:$0xff]  ;;  %v586_v47 = vmul.f32 %v321_v41, %v321_v41 }
  0xff   : > { %v435_v58 = vadd.f32 %v434_v54, %v307_v49  ;;  %v698_v60 = vadd.f32 %v697_v56, %v571_v51  ;;  %v323_v49 = vld [vmem:[%s1184_s20 + $0x3f0] sm:$0xff]  ;;  %v587_v51 = vmul.f32 %v322_v45, %v322_v45 }
 0x101   : > { %v436_v62 = vadd.f32 %v435_v58, %v308_v53  ;;  %v699_v0 = vadd.f32 %v698_v60, %v572_v55  ;;  %v324_v53 = vld [vmem:[%s1184_s20 + $0x3f8] sm:$0xff]  ;;  %v588_v55 = vmul.f32 %v323_v49, %v323_v49  ;;  %s992_s20 = scalar_lea.hbm %s1399_s1, 2 }
 0x102   : > { %v589_v58 = vmul.f32 %v324_v53, %v324_v53  ;;  %p994_p8 = scmp.lt.s32.totalorder %s992_s20, %s988_s8 }
 0x103   : > { %v437_v2 = vadd.f32 %v436_v62, %v309_v57  ;;  %v700_v4 = vadd.f32 %v699_v0, %v573_v59 }
 0x104   : > { %p995_p10 = por %p994_p8, %p993_p7 }
 0x105   : > { %v438_v6 = vadd.f32 %v437_v2, %v310_v61  ;;  %v701_v8 = vadd.f32 %v700_v4, %v574_v63 }
 0x106   : > { %p996_p13 = pnand %p995_p10, %p991_p6 }
 0x107   : > { %v439_v10 = vadd.f32 %v438_v6, %v311_v1  ;;  %v702_v12 = vadd.f32 %v701_v8, %v575_v3 }
 0x109   : > { %v440_v14 = vadd.f32 %v439_v10, %v312_v5  ;;  %v703_v16 = vadd.f32 %v702_v12, %v576_v7  ;;  %v325_v7 = vld [vmem:[%s1191_s19] sm:$0x1] }
 0x10a   : > { %v461_v12 = vld [vmem:[%s1195_s25] sm:$0x1] }
 0x10b   : > { %v441_v18 = vadd.f32 %v440_v14, %v313_v9  ;;  %v704_v20 = vadd.f32 %v703_v16, %v577_v11 }
 0x10d   : > { %v442_v22 = vadd.f32 %v441_v18, %v314_v13  ;;  %v705_v24 = vadd.f32 %v704_v20, %v578_v15 }
 0x10f   : > { %v443_v26 = vadd.f32 %v442_v22, %v315_v17  ;;  %v706_v28 = vadd.f32 %v705_v24, %v579_v19 }
 0x111   : > { %v444_v30 = vadd.f32 %v443_v26, %v316_v21  ;;  %v707_v32 = vadd.f32 %v706_v28, %v580_v23 }
 0x113   : > { %v445_v34 = vadd.f32 %v444_v30, %v317_v25  ;;  %v708_v36 = vadd.f32 %v707_v32, %v581_v27 }
 0x115   : > { %v446_v38 = vadd.f32 %v445_v34, %v318_v29  ;;  %v709_v40 = vadd.f32 %v708_v36, %v582_v31 }
 0x117   : > { %v447_v42 = vadd.f32 %v446_v38, %v319_v33  ;;  %v710_v44 = vadd.f32 %v709_v40, %v583_v35 }
 0x119   : > { %v448_v46 = vadd.f32 %v447_v42, %v320_v37  ;;  %v711_v48 = vadd.f32 %v710_v44, %v584_v39 }
 0x11b   : > { %v449_v50 = vadd.f32 %v448_v46, %v321_v41  ;;  %v712_v52 = vadd.f32 %v711_v48, %v585_v43 }
 0x11d   : > { %v450_v54 = vadd.f32 %v449_v50, %v322_v45  ;;  %v713_v56 = vadd.f32 %v712_v52, %v586_v47 }
 0x11f   : > { %v451_v57 = vadd.f32 %v450_v54, %v323_v49  ;;  %v714_v59 = vadd.f32 %v713_v56, %v587_v51 }
 0x121   : > { %v452_v60 = vadd.f32 %v451_v57, %v324_v53  ;;  %v715_v61 = vadd.f32 %v714_v59, %v588_v55 }
 0x123   : > { %v453_v62 = vrot.slane %v452_v60, 4  ;;  %v716_v63 = vadd.f32 %v715_v61, %v589_v58 }
 0x125   : > { %v454_v0 = vadd.f32 %v453_v62, %v452_v60  ;;  %v717_v1 = vrot.slane %v716_v63, 4 }
 0x127   : > { %v455_v2 = vrot.slane %v454_v0, 2  ;;  %v718_v3 = vadd.f32 %v717_v1, %v716_v63 }
 0x129   : > { %v456_v4 = vadd.f32 %v455_v2, %v454_v0  ;;  %v719_v5 = vrot.slane %v718_v3, 2 }
 0x12b   : > { %v457_v6 = vrot.slane %v456_v4, 1  ;;  %v720_v8 = vadd.f32 %v719_v5, %v718_v3 }
 0x12d   : > { %v458_v9 = vadd.f32 %v457_v6, %v456_v4  ;;  %v721_v10 = vrot.slane %v720_v8, 1 }
 0x12f   : > { %v459_v11 = vadd.f32 %v458_v9, %v325_v7  ;;  %v722_v13 = vadd.f32 %v721_v10, %v720_v8 }
 0x131   : > { %460 = vst [vmem:[%s1191_s19] sm:$0x1] %v459_v11  ;;  %v723_v14 = vadd.f32 %v722_v13, %v461_v12 }
 0x132   : > { %999 = shalt.err (!%p996_p13)
}
 0x133   : > { %874 = dma.vmem_to_hbm [thread:$0]  (%p1157_p9), %s741_s3, 16, %s743_s4, %s726_s12   ;;  %724 = vst [vmem:[%s1195_s25] sm:$0x1] %v723_v14 }
 0x134   : > { %s730_s19 = scalar_lea.sflag [#allocation7], %s1180_s15  ;;  %s1014_s27 = sshra.s32 %s756_s6, 4  ;;  %s1015_s27 = int_to_ptr.hbm [resolvable:$true] %s1014_s27 }
 0x135   : > { %s1016_s28 = scalar_lea.hbm %s1015_s27, 1  ;;  %s1020_s7 = scalar_lea.hbm %s1400_s2, 2 }
 0x136   : > { %p1017_p0 = scmp.ne.s32.totalorder %s1015_s27, %s1016_s28  ;;  %p1021_p3 = scmp.lt.s32.totalorder %s1015_s27, %s1400_s2 }
 0x137   : > { %p1022_p4 = scmp.lt.s32.totalorder %s1020_s7, %s1016_s28 }
 0x138   : > { %p1018_p1 = pnand %p1017_p0, %p1157_p9 }
 0x139   : > { %p1023_p5 = por %p1022_p4, %p1021_p3 }
 0x13a   : > { %p1019_p2 = pneg %p1018_p1 }
 0x13c   : > { %p1024_p6 = pnand %p1023_p5, %p1019_p2 }
 0x13e   : > { %1027 = shalt.err (!%p1024_p6)
}
 0x13f   : > { %875 = dma.vmem_to_hbm [thread:$0]  (%p1157_p9), %s1344_s5, 16, %s756_s6, %s730_s19  }
 0x140 PF: > { %s767_s15 = sand.u32 1, %s1066_s9   ;;  %p883_p7 = pnand %p863_p12, %p1164_p11 }
 0x141   : > { %s768_s25 = scalar_lea.sflag [#allocation4], %s767_s15 }
 0x142   : > { %p884_p8 = pneg %p883_p7 }
 0x144   : > { %1057 = dma.done.wait (%p884_p8), %s768_s25, 16  }
 0x145   : > { %1059 = vsyncadd (%p884_p8), %s768_s25, 4294967280  ;;  %s777_s3 = scalar_lea.sflag [#allocation7], %s767_s15 }
 0x146   : > { %1061 = dma.done.wait (%p884_p8), %s777_s3, 16  }
 0x147   : > { %1063 = vsyncadd (%p884_p8), %s777_s3, 4294967280  ;;  %s22_s14 = sadd.s32 1, %s1086_s14   ;;  %s1405_s9 = smov %s1070_s10 }
 0x148   : > { %p19_p10 = scmp.ge.s32.totalorder %s22_s14, 4   ;;  %s1406_s10 = smov %s1074_s11 }
 0x149   : > { %s1407_s11 = smov %s1162_s23  ;;  %s1408_s12 = smov %s1082_s13 }
 0x14a   : > { %s1409_s13 = smov %s1411_s17  ;;  %21 = sbr.rel (!%p19_p10) target bundleno = 8 (0x8), region = 90 }
 0x14f   :  { %782 = vsyncpa [#allocation3], 1 }
 0x150   :  { %784 = vsyncpa [#allocation3 + $0x1], 1 }
 0x151   :  { %785 = vsyncpa [#allocation4], 1 }
 0x152   :  { %787 = vsyncpa [#allocation4 + $0x1], 1 }
 0x153   :  { %788 = vsyncpa [#allocation7], 1 }
 0x154   :  { %790 = vsyncpa [#allocation7 + $0x1], 1 }

</bundles_post_ra>
